<compile_context>
chip_gen: v6e
topology: v6e:2x2x1
jax: 0.10.0
libtpu: 0.0.40
codegen_flags: <defaults>
</compile_context>

<pallas_src>
import math

import jax
import jax.numpy as jnp
from jax.experimental import pallas as pl
from jax.experimental.pallas import tpu as pltpu


def _mlp_kernel(x_ref, w1_ref, b1_ref, w2_ref, b2_ref, w3_ref, b3_ref, out_ref):
    # x_ref tile: (TILE_R, S*n_features) — S samples packed per row, lane-dense.
    x = x_ref[...].astype(jnp.float32)                           # PyTorch input.float()
    h1 = jnp.dot(x, w1_ref[...], preferred_element_type=jnp.float32) + b1_ref[...]
    h1 = jnp.maximum(h1, 0.0)                                    # F.relu
    h2 = jnp.dot(h1, w2_ref[...], preferred_element_type=jnp.float32) + b2_ref[...]
    h2 = jnp.maximum(h2, 0.0)                                    # F.relu
    out = jnp.dot(h2, w3_ref[...], preferred_element_type=jnp.float32) + b3_ref[...]
    out_ref[...] = out.astype(out_ref.dtype)


def mlp_reference(x, params):
    """Pure-JAX reference — same math as the PyTorch module."""
    h = jnp.maximum(x.astype(jnp.float32) @ params["w1"].T + params["b1"], 0.0)
    h = jnp.maximum(h @ params["w2"].T + params["b2"], 0.0)
    return h @ params["w3"].T + params["b3"]


def mlp_forward(x, params, *, max_tile_b=32768, small_batch_threshold=2048,
                force_pallas=False):
    """Forward pass of the DQN MLP.

    x: (batch, n_features)  — same layout as the PyTorch module.
    params: PyTorch-layout parameters: w* is (out_dim, in_dim), b* is (out_dim,).
    Returns: (batch, n_actions) float32.
    """
    w1, b1 = params["w1"], params["b1"]
    w2, b2 = params["w2"], params["b2"]
    w3, b3 = params["w3"], params["b3"]

    batch, n_features = x.shape
    h1_dim, h2_dim = w1.shape[0], w2.shape[0]
    n_actions = w3.shape[0]

    if batch == 0:
        return jnp.zeros((0, n_actions), jnp.float32)

    # Small-batch fast path (DQN acting path, batch ~2-32): fixed Pallas/pad costs
    # dominate there, XLA's fused dense path is faster and avoids per-batch recompiles.
    if not force_pallas and batch < small_batch_threshold:
        return mlp_reference(x, params)

    # --- choose the packing factor S: smallest S making S*n_features a multiple of 128.
    S = 128 // math.gcd(128, n_features)

    # Block-diagonal weight footprint; for pathological (large) dims fall back to XLA
    # dense math instead of blowing up VMEM.  Never hit for this DQN module (<1 MiB).
    w_big_bytes = 4 * S * S * (n_features * h1_dim + h1_dim * h2_dim + h2_dim * n_actions)
    if w_big_bytes > (16 << 20):
        return mlp_reference(x, params)

    # --- tile selection (in samples).  Granularity = 8 packed rows = 8*S samples.
    gran = 8 * S
    max_tile_b = max(gran, (int(max_tile_b) // gran) * gran)      # round down to granule
    total = pl.cdiv(batch, gran) * gran
    tile_b = min(max_tile_b, total)
    if total >= 2 * gran:
        # Keep >= 2 grid steps so both v7x TensorCores get work (no-op on v5e/v6e).
        half = max(gran, (total // 2) // gran * gran)
        tile_b = min(tile_b, half)
    padded_b = pl.cdiv(batch, tile_b) * tile_b

    rows = padded_b // S
    tile_r = tile_b // S                                          # multiple of 8

    # --- build interleaved block-diagonal weights / tiled biases (once per call, tiny).
    eye = jnp.eye(S, dtype=jnp.float32)
    w1_big = jnp.kron(eye, w1.T.astype(jnp.float32))              # (S*nf,  S*h1)
    w2_big = jnp.kron(eye, w2.T.astype(jnp.float32))              # (S*h1,  S*h2)
    w3_big = jnp.kron(eye, w3.T.astype(jnp.float32))              # (S*h2,  S*na)
    b1_big = jnp.tile(b1.astype(jnp.float32), S).reshape(1, S * h1_dim)
    b2_big = jnp.tile(b2.astype(jnp.float32), S).reshape(1, S * h2_dim)
    b3_big = jnp.tile(b3.astype(jnp.float32), S).reshape(1, S * n_actions)

    # --- input: pad tail only when needed, then a free row-major reshape to packed rows.
    x_in = x if padded_b == batch else jnp.pad(x, ((0, padded_b - batch), (0, 0)))
    x_packed = x_in.reshape(rows, S * n_features)

    # --- explicit VMEM budget: double-buffered x/out tiles + f32 intermediates + weights,
    # with 2x headroom; clamped to [32 MiB, 56 MiB] (under v7x's 64 MiB physical VMEM).
    est = (2 * tile_r * S * n_features * 4
           + 2 * tile_r * S * n_actions * 4
           + tile_r * S * (h1_dim + h2_dim) * 4
           + 2 * w_big_bytes)
    vmem_limit = int(min(56 << 20, max(32 << 20, 2 * est)))

    def const_spec(shape):
        # Constant block index -> fetched once, resident across all grid steps.
        return pl.BlockSpec(shape, lambda i: (0, 0))

    out_packed = pl.pallas_call(
        _mlp_kernel,
        out_shape=jax.ShapeDtypeStruct((rows, S * n_actions), jnp.float32),
        grid=(rows // tile_r,),
        in_specs=[
            pl.BlockSpec((tile_r, S * n_features), lambda i: (i, 0)),  # x: streamed
            const_spec(w1_big.shape), const_spec(b1_big.shape),        # weights: resident
            const_spec(w2_big.shape), const_spec(b2_big.shape),
            const_spec(w3_big.shape), const_spec(b3_big.shape),
        ],
        out_specs=pl.BlockSpec((tile_r, S * n_actions), lambda i: (i, 0)),
        compiler_params=pltpu.CompilerParams(
            dimension_semantics=("parallel",),   # shard batch tiles across TCs on v7x
            vmem_limit_bytes=vmem_limit,
        ),
    )(x_packed, w1_big, b1_big, w2_big, b2_big, w3_big, b3_big)

    # Free reshape back to (padded_b, n_actions); drop padded tail rows if any.
    out = out_packed.reshape(padded_b, n_actions)
    if padded_b != batch:
        out = out[:batch]
    return out


def init_params(key, n_features, n_actions):
    """PyTorch-layout params: weight (out_dim, in_dim), bias (out_dim,);
    PyTorch-style uniform fan-in init."""
    dims = [(n_features, 8), (8, 16), (16, n_actions)]
    names = [("w1", "b1"), ("w2", "b2"), ("w3", "b3")]
    params = {}
    for (wname, bname), (fan_in, fan_out) in zip(names, dims):
        key, kw, kb = jax.random.split(key, 3)
        bound = 1.0 / (fan_in ** 0.5)
        params[wname] = jax.random.uniform(
            kw, (fan_out, fan_in), jnp.float32, -bound, bound)
        params[bname] = jax.random.uniform(
            kb, (fan_out,), jnp.float32, -bound, bound)
    return params


if __name__ == "__main__":
    key = jax.random.PRNGKey(0)
    n_features, n_actions = 4, 4
    params = init_params(key, n_features, n_actions)

    # DQN acting-style batch (batch=2): force it through the Pallas kernel to validate
    # the padded single-tile path, and also check the small-batch fast path.
    key, kx = jax.random.split(key)
    x_small = jax.random.normal(kx, (2, n_features), jnp.float32)
    ref_small = mlp_reference(x_small, params)
    out_small = jax.block_until_ready(mlp_forward(x_small, params, force_pallas=True))
    assert out_small.shape == (2, n_actions)
    assert jnp.allclose(out_small, ref_small, atol=1e-4, rtol=1e-4)
    out_fast = jax.block_until_ready(mlp_forward(x_small, params))   # fast path
    assert jnp.allclose(out_fast, ref_small, atol=1e-4, rtol=1e-4)

    # Training-style, non-aligned batch: exercises tail padding + multi-tile grid
    # (>=2 grid steps so both v7x TensorCores would be used).
    key, kx = jax.random.split(key)
    x_big = jax.random.normal(kx, (3000, n_features), jnp.float32)
    out_big = jax.block_until_ready(mlp_forward(x_big, params))
    assert out_big.shape == (3000, n_actions)
    assert jnp.allclose(out_big, mlp_reference(x_big, params), atol=1e-4, rtol=1e-4)

    print("KERNEL_OK")
</pallas_src>

<mosaic_0001>
module attributes {stable_mosaic.version = 11 : i64} {
  func.func @_mlp_kernel(%arg0: i32, %arg1: memref<8x128xf32, #tpu.memory_space<vmem>>, %arg2: memref<128x256xf32, #tpu.memory_space<vmem>>, %arg3: memref<1x256xf32, #tpu.memory_space<vmem>>, %arg4: memref<256x512xf32, #tpu.memory_space<vmem>>, %arg5: memref<1x512xf32, #tpu.memory_space<vmem>>, %arg6: memref<512x128xf32, #tpu.memory_space<vmem>>, %arg7: memref<1x128xf32, #tpu.memory_space<vmem>>, %arg8: memref<8x128xf32, #tpu.memory_space<vmem>>) attributes {dimension_semantics = [#tpu.dimension_semantics<parallel>], iteration_bounds = array<i64: 1>, scalar_prefetch = 0 : i64, scratch_operands = 0 : i64, tpu.core_type = #tpu.core_type<tc>, window_params = [{transform_indices = @transform_0, window_bounds = array<i64: 8, 128>}, {pipeline_mode = #tpu.pipeline_mode<synchronous>, transform_indices = @transform_1, window_bounds = array<i64: 128, 256>}, {pipeline_mode = #tpu.pipeline_mode<synchronous>, transform_indices = @transform_2, window_bounds = array<i64: 1, 256>}, {pipeline_mode = #tpu.pipeline_mode<synchronous>, transform_indices = @transform_3, window_bounds = array<i64: 256, 512>}, {pipeline_mode = #tpu.pipeline_mode<synchronous>, transform_indices = @transform_4, window_bounds = array<i64: 1, 512>}, {pipeline_mode = #tpu.pipeline_mode<synchronous>, transform_indices = @transform_5, window_bounds = array<i64: 512, 128>}, {pipeline_mode = #tpu.pipeline_mode<synchronous>, transform_indices = @transform_6, window_bounds = array<i64: 1, 128>}, {transform_indices = @transform_7, window_bounds = array<i64: 8, 128>}]} {
    %c0 = arith.constant 0 : index
    %c0_0 = arith.constant 0 : index
    %0 = vector.load %arg1[%c0, %c0_0] : memref<8x128xf32, #tpu.memory_space<vmem>>, vector<8x128xf32>
    %c0_1 = arith.constant 0 : index
    %c0_2 = arith.constant 0 : index
    %1 = vector.load %arg2[%c0_1, %c0_2] : memref<128x256xf32, #tpu.memory_space<vmem>>, vector<128x256xf32>
    %cst = arith.constant dense<0.000000e+00> : vector<8x256xf32>
    %2 = tpu.matmul %0, %1, %cst {dimension_numbers = #tpu.dot_dimension_numbers<[1], [0], [0], [1], [0, 0, 1, 1], [], []>} : vector<8x128xf32>, vector<128x256xf32>, vector<8x256xf32> -> vector<8x256xf32>
    %c0_3 = arith.constant 0 : index
    %c0_4 = arith.constant 0 : index
    %3 = vector.load %arg3[%c0_3, %c0_4] : memref<1x256xf32, #tpu.memory_space<vmem>>, vector<1x256xf32>
    %4 = vector.broadcast %3 : vector<1x256xf32> to vector<8x256xf32>
    %5 = arith.addf %2, %4 : vector<8x256xf32>
    %cst_5 = arith.constant 0.000000e+00 : f32
    %6 = vector.broadcast %cst_5 : f32 to vector<8x256xf32>
    %7 = arith.maximumf %5, %6 : vector<8x256xf32>
    %c0_6 = arith.constant 0 : index
    %c0_7 = arith.constant 0 : index
    %8 = vector.load %arg4[%c0_6, %c0_7] : memref<256x512xf32, #tpu.memory_space<vmem>>, vector<256x512xf32>
    %cst_8 = arith.constant dense<0.000000e+00> : vector<8x512xf32>
    %9 = tpu.matmul %7, %8, %cst_8 {dimension_numbers = #tpu.dot_dimension_numbers<[1], [0], [0], [1], [0, 0, 1, 1], [], []>} : vector<8x256xf32>, vector<256x512xf32>, vector<8x512xf32> -> vector<8x512xf32>
    %c0_9 = arith.constant 0 : index
    %c0_10 = arith.constant 0 : index
    %10 = vector.load %arg5[%c0_9, %c0_10] : memref<1x512xf32, #tpu.memory_space<vmem>>, vector<1x512xf32>
    %11 = vector.broadcast %10 : vector<1x512xf32> to vector<8x512xf32>
    %12 = arith.addf %9, %11 : vector<8x512xf32>
    %cst_11 = arith.constant 0.000000e+00 : f32
    %13 = vector.broadcast %cst_11 : f32 to vector<8x512xf32>
    %14 = arith.maximumf %12, %13 : vector<8x512xf32>
    %c0_12 = arith.constant 0 : index
    %c0_13 = arith.constant 0 : index
    %15 = vector.load %arg6[%c0_12, %c0_13] : memref<512x128xf32, #tpu.memory_space<vmem>>, vector<512x128xf32>
    %cst_14 = arith.constant dense<0.000000e+00> : vector<8x128xf32>
    %16 = tpu.matmul %14, %15, %cst_14 {dimension_numbers = #tpu.dot_dimension_numbers<[1], [0], [0], [1], [0, 0, 1, 1], [], []>} : vector<8x512xf32>, vector<512x128xf32>, vector<8x128xf32> -> vector<8x128xf32>
    %c0_15 = arith.constant 0 : index
    %c0_16 = arith.constant 0 : index
    %17 = vector.load %arg7[%c0_15, %c0_16] : memref<1x128xf32, #tpu.memory_space<vmem>>, vector<1x128xf32>
    %18 = vector.broadcast %17 : vector<1x128xf32> to vector<8x128xf32>
    %19 = arith.addf %16, %18 : vector<8x128xf32>
    %c0_17 = arith.constant 0 : index
    %c0_18 = arith.constant 0 : index
    %20 = vector.load %arg8[%c0_17, %c0_18] : memref<8x128xf32, #tpu.memory_space<vmem>>, vector<8x128xf32>
    tpu.vector_store %arg8[%c0_17, %c0_18], %19 {strides = array<i32>} : memref<8x128xf32, #tpu.memory_space<vmem>>, vector<8x128xf32>,
    return
  }
  func.func @transform_0(%arg0: i32) -> (i32, i32) {
    %c0_i32 = arith.constant 0 : i32
    %c0_i32_0 = arith.constant 0 : i32
    return %arg0, %c0_i32 : i32, i32
  }
  func.func @transform_1(%arg0: i32) -> (i32, i32) {
    %c0_i32 = arith.constant 0 : i32
    %c0_i32_0 = arith.constant 0 : i32
    %c0_i32_1 = arith.constant 0 : i32
    return %c0_i32, %c0_i32_0 : i32, i32
  }
  func.func @transform_2(%arg0: i32) -> (i32, i32) {
    %c0_i32 = arith.constant 0 : i32
    %c0_i32_0 = arith.constant 0 : i32
    %c0_i32_1 = arith.constant 0 : i32
    return %c0_i32, %c0_i32_0 : i32, i32
  }
  func.func @transform_3(%arg0: i32) -> (i32, i32) {
    %c0_i32 = arith.constant 0 : i32
    %c0_i32_0 = arith.constant 0 : i32
    %c0_i32_1 = arith.constant 0 : i32
    return %c0_i32, %c0_i32_0 : i32, i32
  }
  func.func @transform_4(%arg0: i32) -> (i32, i32) {
    %c0_i32 = arith.constant 0 : i32
    %c0_i32_0 = arith.constant 0 : i32
    %c0_i32_1 = arith.constant 0 : i32
    return %c0_i32, %c0_i32_0 : i32, i32
  }
  func.func @transform_5(%arg0: i32) -> (i32, i32) {
    %c0_i32 = arith.constant 0 : i32
    %c0_i32_0 = arith.constant 0 : i32
    %c0_i32_1 = arith.constant 0 : i32
    return %c0_i32, %c0_i32_0 : i32, i32
  }
  func.func @transform_6(%arg0: i32) -> (i32, i32) {
    %c0_i32 = arith.constant 0 : i32
    %c0_i32_0 = arith.constant 0 : i32
    %c0_i32_1 = arith.constant 0 : i32
    return %c0_i32, %c0_i32_0 : i32, i32
  }
  func.func @transform_7(%arg0: i32) -> (i32, i32) {
    %c0_i32 = arith.constant 0 : i32
    %c0_i32_0 = arith.constant 0 : i32
    return %arg0, %c0_i32 : i32, i32
  }
}

</mosaic_0001>

<bundles_post_ra>
// kernel: tpu_custom_call.1
= control target key start
LH: loop header
LB: loop body
LE: loop exit
PB: predicated region body
PF: predicated region fallthrough
CT: control target
= control target key end

     0   :  { %12 = vsyncpa [#allocation3], 0  ;;  %s1004_s0 = inlined_call_operand.hbm [shape: f32[8,128], index: 0, kind: input, shape index: {}]   ;;  %s1005_s1 = inlined_call_operand.hbm [shape: f32[128,256], index: 1, kind: input, shape index: {}]   ;;  %s1006_s2 = inlined_call_operand.vmem [shape: f32[1,256], index: 2, kind: input, shape index: {}]   ;;  %s1007_s3 = inlined_call_operand.hbm [shape: f32[256,512], index: 3, kind: input, shape index: {}]   ;;  %s1008_s4 = inlined_call_operand.vmem [shape: f32[1,512], index: 4, kind: input, shape index: {}]   ;;  %s1009_s5 = inlined_call_operand.hbm [shape: f32[512,128], index: 5, kind: input, shape index: {}]   ;;  %s1010_s6 = inlined_call_operand.vmem [shape: f32[1,128], index: 6, kind: input, shape index: {}]   ;;  %s1011_s7 = inlined_call_operand.hbm [shape: f32[8,128], index: 7, kind: output, shape index: {}]  }
   0x1   :  { %13 = vsyncpa [#allocation6], 0 }
   0x2   :  { %14 = vsyncpa [#allocation9], 0 }
   0x3   :  { %15 = vsyncpa [#allocation4], 0  ;;  %s914_s24 = smov [#allocation5]  }
   0x4   :  { %s31_s25 = sshll.u32 %s914_s24, 4  ;;  %s32_s25 = int_to_ptr.vmem [resolvable:$true] %s31_s25 }
   0x5   :  { %s814_s26 = scalar_lea.vmem %s32_s25, 4096  ;;  %p819_p1 = scmp.lt.s32.totalorder %s32_s25, %s32_s25 }
   0x6   :  { %p815_p0 = scmp.ne.s32.totalorder %s32_s25, %s814_s26  ;;  %p820_p2 = scmp.lt.s32.totalorder %s814_s26, %s814_s26 }
   0x8   :  { %p821_p3 = por %p820_p2, %p819_p1 }
   0xa   :  { %p822_p4 = pnand %p821_p3, %p815_p0 }
   0xc   :  { %825 = shalt.err (!%p822_p4)
}
   0xd   :  { %s915_s27 = smov 256   ;;  %s916_s28 = smov 16  }
   0xe   :  { %37 = dma.hbm_to_vmem [thread:$0]  %s1005_s1, 4096, %s32_s25, [#allocation6], %s915_s27, %s915_s27, %s916_s28  }
   0xf   :  { %s917_s8 = smov [#allocation2]   ;;  %s918_s10 = smov [#allocation7]  }
  0x10   :  { %s22_s9 = sshll.u32 %s917_s8, 4  ;;  %s45_s11 = sshll.u32 %s918_s10, 4  ;;  %s23_s9 = int_to_ptr.vmem [resolvable:$true] %s22_s9  ;;  %s46_s11 = int_to_ptr.vmem [resolvable:$true] %s45_s11 }
  0x11   :  { %s834_s12 = scalar_lea.vmem %s23_s9, 128  ;;  %p839_p6 = scmp.lt.s32.totalorder %s23_s9, %s23_s9 }
  0x12   :  { %p835_p5 = scmp.ne.s32.totalorder %s23_s9, %s834_s12  ;;  %p840_p7 = scmp.lt.s32.totalorder %s834_s12, %s834_s12 }
  0x14   :  { %p841_p8 = por %p840_p7, %p839_p6 }
  0x16   :  { %p842_p9 = pnand %p841_p8, %p835_p5 }
  0x18   :  { %845 = shalt.err (!%p842_p9)
}
  0x19   :  { %25 = dma.hbm_to_vmem [thread:$0]  %s1004_s0, 128, %s23_s9, [#allocation3]  }
  0x1a   :  { %s854_s15 = scalar_lea.vmem %s46_s11, 16384  ;;  %p859_p11 = scmp.lt.s32.totalorder %s46_s11, %s46_s11 }
  0x1b   :  { %p855_p10 = scmp.ne.s32.totalorder %s46_s11, %s854_s15  ;;  %p860_p12 = scmp.lt.s32.totalorder %s854_s15, %s854_s15 }
  0x1d   :  { %p861_p13 = por %p860_p12, %p859_p11 }
  0x1f   :  { %p862_p0 = pnand %p861_p13, %p855_p10 }
  0x21   :  { %865 = shalt.err (!%p862_p0)
}
  0x22   :  { %s919_s1 = smov 512   ;;  %s920_s16 = smov 32  }
  0x23   :  { %51 = dma.hbm_to_vmem [thread:$0]  %s1007_s3, 16384, %s46_s11, [#allocation6], %s919_s1, %s919_s1, %s920_s16  }
  0x24   :  { %s921_s19 = smov [#allocation8]  }
  0x25   :  { %s59_s20 = sshll.u32 %s921_s19, 4  ;;  %s60_s20 = int_to_ptr.vmem [resolvable:$true] %s59_s20 }
  0x26   :  { %s874_s21 = scalar_lea.vmem %s60_s20, 8192  ;;  %p879_p2 = scmp.lt.s32.totalorder %s60_s20, %s60_s20 }
  0x27   :  { %p875_p1 = scmp.ne.s32.totalorder %s60_s20, %s874_s21  ;;  %p880_p3 = scmp.lt.s32.totalorder %s874_s21, %s874_s21 }
  0x29   :  { %p881_p4 = por %p880_p3, %p879_p2 }
  0x2b   :  { %p882_p5 = pnand %p881_p4, %p875_p1 }
  0x2d   :  { %885 = shalt.err (!%p882_p5)
}
  0x2e   :  { %s922_s0 = smov 128   ;;  %s923_s22 = smov 8  }
  0x2f   :  { %65 = dma.hbm_to_vmem [thread:$0]  %s1009_s5, 8192, %s60_s20, [#allocation9], %s922_s0, %s922_s0, %s923_s22  }
  0x30   :  { %906 = dma.done.wait [#allocation3], 128  }
  0x31   :  { %907 = vsyncadd [#allocation3], 4294967168 }
  0x32   :  { %908 = dma.done.wait [#allocation6], 20480  }
  0x33   :  { %909 = vsyncadd [#allocation6], 4294946816 }
  0x34   :  { %910 = dma.done.wait [#allocation9], 8192  }
  0x35   :  { %911 = vsyncadd [#allocation9], 4294959104  ;;  %v924_v0 = vmov 0.0   ;;  %v112_v1 = vld [vmem:[#allocation5 + $0xf8] sm:$0xff]  ;;  %v111_v2 = vld [vmem:[#allocation5 + $0xf0] sm:$0xff]  ;;  %s925_s27 = smov [#allocation10]  }
  0x36   :  { %189 = vmatprep.mubr.f32.mxu0 %v924_v0  ;;  %v110_v3 = vld [vmem:[#allocation5 + $0xe8] sm:$0xff]  ;;  %125 = vmatprep.subr.mxu0 %v112_v1  ;;  %v109_v4 = vld [vmem:[#allocation5 + $0xe0] sm:$0xff]  ;;  %v108_v5 = vld [vmem:[#allocation5 + $0xd8] sm:$0xff]  ;;  %s712_s28 = sshll.u32 %s925_s27, 4  ;;  %s713_s28 = int_to_ptr.vmem [resolvable:$true] %s712_s28 }
  0x37   :  { %126 = vmatpush1.msra.mxu0 %v111_v2  ;;  %v107_v6 = vld [vmem:[#allocation5 + $0xd0] sm:$0xff]  ;;  %v106_v7 = vld [vmem:[#allocation5 + $0xc8] sm:$0xff]  ;;  %v105_v8 = vld [vmem:[#allocation5 + $0xc0] sm:$0xff]  ;;  %s886_s29 = scalar_lea.vmem %s713_s28, 128  ;;  %p891_p7 = scmp.lt.s32.totalorder %s713_s28, %s713_s28 }
  0x38   :  { %127 = vmatprep.subr.mxu0 %v110_v3  ;;  %v104_v9 = vld [vmem:[#allocation5 + $0xb8] sm:$0xff]  ;;  %v103_v10 = vld [vmem:[#allocation5 + $0xb0] sm:$0xff]  ;;  %v102_v11 = vld [vmem:[#allocation5 + $0xa8] sm:$0xff]  ;;  %p887_p6 = scmp.ne.s32.totalorder %s713_s28, %s886_s29  ;;  %p892_p8 = scmp.lt.s32.totalorder %s886_s29, %s886_s29 }
  0x39   :  { %128 = vmatpush1.msra.mxu0 %v109_v4  ;;  %v101_v12 = vld [vmem:[#allocation5 + $0xa0] sm:$0xff]  ;;  %v100_v13 = vld [vmem:[#allocation5 + $0x98] sm:$0xff]  ;;  %v99_v14 = vld [vmem:[#allocation5 + $0x90] sm:$0xff] }
  0x3a   :  { %129 = vmatprep.subr.mxu0 %v108_v5  ;;  %v259_v15 = vld [vmem:[#allocation7 + $0x1e8] sm:$0xff]  ;;  %v258_v16 = vld [vmem:[#allocation7 + $0x1e0] sm:$0xff]  ;;  %v96_v22 = vld [vmem:[#allocation5 + $0x78] sm:$0xff]  ;;  %p893_p9 = por %p892_p8, %p891_p7 }
  0x3b   :  { %130 = vmatpush1.msra.mxu0 %v107_v6  ;;  %v98_v17 = vld [vmem:[#allocation5 + $0x88] sm:$0xff]  ;;  %348 = vmatprep.subr.mxu1 %v259_v15  ;;  %v97_v19 = vld [vmem:[#allocation5 + $0x80] sm:$0xff]  ;;  %v95_v24 = vld [vmem:[#allocation5 + $0x70] sm:$0xff] }
  0x3c   :  { %131 = vmatprep.subr.mxu0 %v106_v7  ;;  %v255_v18 = vld [vmem:[#allocation7 + $0x1c8] sm:$0xff]  ;;  %349 = vmatpush1.msra.mxu1 %v258_v16  ;;  %v254_v20 = vld [vmem:[#allocation7 + $0x1c0] sm:$0xff]  ;;  %v92_v30 = vld [vmem:[#allocation5 + $0x58] sm:$0xff]  ;;  %p894_p10 = pnand %p893_p9, %p887_p6 }
  0x3d   :  { %132 = vmatpush1.msra.mxu0 %v105_v8  ;;  %v251_v21 = vld [vmem:[#allocation7 + $0x1a8] sm:$0xff]  ;;  %350 = vmatprep.subr.mxu1 %v255_v18  ;;  %v250_v23 = vld [vmem:[#allocation7 + $0x1a0] sm:$0xff]  ;;  %v91_v32 = vld [vmem:[#allocation5 + $0x50] sm:$0xff] }
  0x3e   :  { %133 = vmatprep.subr.mxu0 %v104_v9  ;;  %351 = vmatpush1.msra.mxu1 %v254_v20  ;;  %v247_v25 = vld [vmem:[#allocation7 + $0x188] sm:$0xff]  ;;  %v246_v27 = vld [vmem:[#allocation7 + $0x180] sm:$0xff]  ;;  %v88_v38 = vld [vmem:[#allocation5 + $0x38] sm:$0xff] }
  0x3f   :  { %134 = vmatpush1.msra.mxu0 %v103_v10  ;;  %v94_v26 = vld [vmem:[#allocation5 + $0x68] sm:$0xff]  ;;  %352 = vmatprep.subr.mxu1 %v251_v21  ;;  %v93_v28 = vld [vmem:[#allocation5 + $0x60] sm:$0xff]  ;;  %v87_v40 = vld [vmem:[#allocation5 + $0x30] sm:$0xff] }
  0x40   :  { %135 = vmatprep.subr.mxu0 %v102_v11  ;;  %353 = vmatpush1.msra.mxu1 %v250_v23  ;;  %v243_v29 = vld [vmem:[#allocation7 + $0x168] sm:$0xff]  ;;  %v242_v31 = vld [vmem:[#allocation7 + $0x160] sm:$0xff]  ;;  %v84_v46 = vld [vmem:[#allocation5 + $0x18] sm:$0xff] }
  0x41   :  { %136 = vmatpush1.msra.mxu0 %v101_v12  ;;  %354 = vmatprep.subr.mxu1 %v247_v25  ;;  %v239_v33 = vld [vmem:[#allocation7 + $0x148] sm:$0xff]  ;;  %v238_v35 = vld [vmem:[#allocation7 + $0x140] sm:$0xff]  ;;  %v83_v48 = vld [vmem:[#allocation5 + $0x10] sm:$0xff] }
  0x42   :  { %137 = vmatprep.subr.mxu0 %v100_v13  ;;  %355 = vmatpush1.msra.mxu1 %v246_v27  ;;  %v90_v34 = vld [vmem:[#allocation5 + $0x48] sm:$0xff]  ;;  %v89_v36 = vld [vmem:[#allocation5 + $0x40] sm:$0xff]  ;;  %v80_v54 = vld [vmem:[#allocation2] sm:$0xff] }
  0x43   :  { %138 = vmatpush1.msra.mxu0 %v99_v14  ;;  %356 = vmatprep.subr.mxu1 %v243_v29  ;;  %v235_v37 = vld [vmem:[#allocation7 + $0x128] sm:$0xff]  ;;  %v234_v39 = vld [vmem:[#allocation7 + $0x120] sm:$0xff]  ;;  %v261_v55 = vld [vmem:[#allocation7 + $0x1f8] sm:$0xff] }
  0x44   :  { %139 = vmatprep.subr.mxu0 %v98_v17  ;;  %357 = vmatpush1.msra.mxu1 %v242_v31  ;;  %v231_v41 = vld [vmem:[#allocation7 + $0x108] sm:$0xff]  ;;  %v230_v43 = vld [vmem:[#allocation7 + $0x100] sm:$0xff]  ;;  %v260_v56 = vld [vmem:[#allocation7 + $0x1f0] sm:$0xff] }
  0x45   :  { %140 = vmatpush1.msra.mxu0 %v97_v19  ;;  %358 = vmatprep.subr.mxu1 %v239_v33  ;;  %v86_v42 = vld [vmem:[#allocation5 + $0x28] sm:$0xff]  ;;  %v85_v44 = vld [vmem:[#allocation5 + $0x20] sm:$0xff]  ;;  %v257_v58 = vld [vmem:[#allocation7 + $0x1d8] sm:$0xff] }
  0x46   :  { %141 = vmatprep.subr.mxu0 %v96_v22  ;;  %359 = vmatpush1.msra.mxu1 %v238_v35  ;;  %v227_v45 = vld [vmem:[#allocation7 + $0xe8] sm:$0xff]  ;;  %v226_v47 = vld [vmem:[#allocation7 + $0xe0] sm:$0xff]  ;;  %v256_v60 = vld [vmem:[#allocation7 + $0x1d0] sm:$0xff] }
  0x47   :  { %142 = vmatpush1.msra.mxu0 %v95_v24  ;;  %360 = vmatprep.subr.mxu1 %v235_v37  ;;  %v223_v49 = vld [vmem:[#allocation7 + $0xc8] sm:$0xff]  ;;  %v222_v51 = vld [vmem:[#allocation7 + $0xc0] sm:$0xff]  ;;  %v253_v62 = vld [vmem:[#allocation7 + $0x1b8] sm:$0xff] }
  0x48   :  { %143 = vmatprep.subr.mxu0 %v94_v26  ;;  %361 = vmatpush1.msra.mxu1 %v234_v39  ;;  %v82_v50 = vld [vmem:[#allocation5 + $0x8] sm:$0xff]  ;;  %v81_v52 = vld [vmem:[#allocation5] sm:$0xff]  ;;  %v252_v0 = vld [vmem:[#allocation7 + $0x1b0] sm:$0xff] }
  0x49   :  { %144 = vmatpush1.msra.mxu0 %v93_v28  ;;  %362 = vmatprep.subr.mxu1 %v231_v41  ;;  %v219_v53 = vld [vmem:[#allocation7 + $0xa8] sm:$0xff]  ;;  %v218_v57 = vld [vmem:[#allocation7 + $0xa0] sm:$0xff]  ;;  %v249_v2 = vld [vmem:[#allocation7 + $0x198] sm:$0xff] }
  0x4a   :  { %145 = vmatprep.subr.mxu0 %v92_v30  ;;  %363 = vmatpush1.msra.mxu1 %v230_v43  ;;  %v215_v59 = vld [vmem:[#allocation7 + $0x88] sm:$0xff]  ;;  %v214_v61 = vld [vmem:[#allocation7 + $0x80] sm:$0xff]  ;;  %v248_v4 = vld [vmem:[#allocation7 + $0x190] sm:$0xff] }
  0x4b   :  { %146 = vmatpush1.msra.mxu0 %v91_v32  ;;  %364 = vmatprep.subr.mxu1 %v227_v45  ;;  %v211_v63 = vld [vmem:[#allocation7 + $0x68] sm:$0xff]  ;;  %v210_v1 = vld [vmem:[#allocation7 + $0x60] sm:$0xff]  ;;  %v245_v6 = vld [vmem:[#allocation7 + $0x178] sm:$0xff] }
  0x4c   :  { %147 = vmatprep.subr.mxu0 %v90_v34  ;;  %365 = vmatpush1.msra.mxu1 %v226_v47  ;;  %v207_v3 = vld [vmem:[#allocation7 + $0x48] sm:$0xff]  ;;  %v206_v5 = vld [vmem:[#allocation7 + $0x40] sm:$0xff]  ;;  %v244_v8 = vld [vmem:[#allocation7 + $0x170] sm:$0xff] }
  0x4d   :  { %148 = vmatpush1.msra.mxu0 %v89_v36  ;;  %366 = vmatprep.subr.mxu1 %v223_v49  ;;  %v203_v7 = vld [vmem:[#allocation7 + $0x28] sm:$0xff]  ;;  %v202_v9 = vld [vmem:[#allocation7 + $0x20] sm:$0xff]  ;;  %v241_v10 = vld [vmem:[#allocation7 + $0x158] sm:$0xff] }
  0x4e   :  { %149 = vmatprep.subr.mxu0 %v88_v38  ;;  %367 = vmatpush1.msra.mxu1 %v222_v51  ;;  %v199_v11 = vld [vmem:[#allocation7 + $0x8] sm:$0xff]  ;;  %v240_v12 = vld [vmem:[#allocation7 + $0x150] sm:$0xff]  ;;  %v198_v13 = vld [vmem:[#allocation7] sm:$0xff] }
  0x4f   :  { %150 = vmatpush1.msra.mxu0 %v87_v40  ;;  %368 = vmatprep.subr.mxu1 %v219_v53  ;;  %v237_v14 = vld [vmem:[#allocation7 + $0x138] sm:$0xff]  ;;  %v323_v15 = vld [vmem:[#allocation7 + $0x3e8] sm:$0xff]  ;;  %v236_v16 = vld [vmem:[#allocation7 + $0x130] sm:$0xff] }
  0x50   :  { %151 = vmatprep.subr.mxu0 %v86_v42  ;;  %369 = vmatpush1.msra.mxu1 %v218_v57  ;;  %v322_v17 = vld [vmem:[#allocation7 + $0x3e0] sm:$0xff]  ;;  %v233_v18 = vld [vmem:[#allocation7 + $0x118] sm:$0xff]  ;;  %v319_v19 = vld [vmem:[#allocation7 + $0x3c8] sm:$0xff] }
  0x51   :  { %152 = vmatpush1.msra.mxu0 %v85_v44  ;;  %370 = vmatprep.subr.mxu1 %v215_v59  ;;  %v232_v20 = vld [vmem:[#allocation7 + $0x110] sm:$0xff]  ;;  %v318_v21 = vld [vmem:[#allocation7 + $0x3c0] sm:$0xff]  ;;  %v229_v22 = vld [vmem:[#allocation7 + $0xf8] sm:$0xff] }
  0x52   :  { %153 = vmatprep.subr.mxu0 %v84_v46  ;;  %371 = vmatpush1.msra.mxu1 %v214_v61  ;;  %v315_v23 = vld [vmem:[#allocation7 + $0x3a8] sm:$0xff]  ;;  %v228_v24 = vld [vmem:[#allocation7 + $0xf0] sm:$0xff]  ;;  %v314_v25 = vld [vmem:[#allocation7 + $0x3a0] sm:$0xff] }
  0x53   :  { %154 = vmatpush1.msra.mxu0 %v83_v48  ;;  %372 = vmatprep.subr.mxu1 %v211_v63  ;;  %v225_v26 = vld [vmem:[#allocation7 + $0xd8] sm:$0xff]  ;;  %v311_v27 = vld [vmem:[#allocation7 + $0x388] sm:$0xff]  ;;  %v224_v28 = vld [vmem:[#allocation7 + $0xd0] sm:$0xff] }
  0x54   :  { %155 = vmatprep.subr.mxu0 %v82_v50  ;;  %373 = vmatpush1.msra.mxu1 %v210_v1  ;;  %v310_v29 = vld [vmem:[#allocation7 + $0x380] sm:$0xff]  ;;  %v221_v30 = vld [vmem:[#allocation7 + $0xb8] sm:$0xff]  ;;  %v307_v31 = vld [vmem:[#allocation7 + $0x368] sm:$0xff] }
  0x55   :  { %156 = vmatpush1.msra.mxu0 %v81_v52  ;;  %374 = vmatprep.subr.mxu1 %v207_v3  ;;  %v220_v32 = vld [vmem:[#allocation7 + $0xb0] sm:$0xff]  ;;  %v306_v33 = vld [vmem:[#allocation7 + $0x360] sm:$0xff]  ;;  %v217_v34 = vld [vmem:[#allocation7 + $0x98] sm:$0xff] }
  0x56   :  { %190 = vmatmul.mubr.f32.vlgmr.msra.gmra.mxu0 %v80_v54  ;;  %419 = vmatprep.subr.mxu0 %v261_v55  ;;  %v303_v35 = vld [vmem:[#allocation7 + $0x348] sm:$0xff]  ;;  %v216_v36 = vld [vmem:[#allocation7 + $0x90] sm:$0xff]  ;;  %v302_v37 = vld [vmem:[#allocation7 + $0x340] sm:$0xff] }
  0x57   :  { %420 = vmatpush1.msra.mxu0 %v260_v56  ;;  %375 = vmatpush1.msra.mxu1 %v206_v5  ;;  %v213_v38 = vld [vmem:[#allocation7 + $0x78] sm:$0xff]  ;;  %v299_v39 = vld [vmem:[#allocation7 + $0x328] sm:$0xff]  ;;  %v212_v40 = vld [vmem:[#allocation7 + $0x70] sm:$0xff] }
  0x58   :  { %421 = vmatprep.subr.mxu0 %v257_v58  ;;  %376 = vmatprep.subr.mxu1 %v203_v7  ;;  %v298_v41 = vld [vmem:[#allocation7 + $0x320] sm:$0xff]  ;;  %v209_v42 = vld [vmem:[#allocation7 + $0x58] sm:$0xff]  ;;  %v295_v43 = vld [vmem:[#allocation7 + $0x308] sm:$0xff] }
  0x59   :  { %422 = vmatpush1.msra.mxu0 %v256_v60  ;;  %377 = vmatpush1.msra.mxu1 %v202_v9  ;;  %v208_v44 = vld [vmem:[#allocation7 + $0x50] sm:$0xff]  ;;  %v294_v45 = vld [vmem:[#allocation7 + $0x300] sm:$0xff]  ;;  %v205_v46 = vld [vmem:[#allocation7 + $0x38] sm:$0xff] }
  0x5a   :  { %423 = vmatprep.subr.mxu0 %v253_v62  ;;  %378 = vmatprep.subr.mxu1 %v199_v11  ;;  %v291_v47 = vld [vmem:[#allocation7 + $0x2e8] sm:$0xff]  ;;  %v204_v48 = vld [vmem:[#allocation7 + $0x30] sm:$0xff]  ;;  %v290_v49 = vld [vmem:[#allocation7 + $0x2e0] sm:$0xff] }
  0x5b   :  { %424 = vmatpush1.msra.mxu0 %v252_v0  ;;  %379 = vmatpush1.msra.mxu1 %v198_v13  ;;  %v201_v50 = vld [vmem:[#allocation7 + $0x18] sm:$0xff]  ;;  %v287_v51 = vld [vmem:[#allocation7 + $0x2c8] sm:$0xff]  ;;  %v200_v52 = vld [vmem:[#allocation7 + $0x10] sm:$0xff] }
  0x5c   :  { %425 = vmatprep.subr.mxu0 %v249_v2  ;;  %380 = vmatprep.subr.mxu1 %v323_v15  ;;  %v286_v53 = vld [vmem:[#allocation7 + $0x2c0] sm:$0xff]  ;;  %v325_v54 = vld [vmem:[#allocation7 + $0x3f8] sm:$0xff]  ;;  %v283_v55 = vld [vmem:[#allocation7 + $0x2a8] sm:$0xff] }
  0x5d   :  { %426 = vmatpush1.msra.mxu0 %v248_v4  ;;  %381 = vmatpush2.msra.mxu1 %v322_v17  ;;  %v324_v56 = vld [vmem:[#allocation7 + $0x3f0] sm:$0xff]  ;;  %v282_v57 = vld [vmem:[#allocation7 + $0x2a0] sm:$0xff]  ;;  %v321_v58 = vld [vmem:[#allocation7 + $0x3d8] sm:$0xff] }
  0x5e   :  { %427 = vmatprep.subr.mxu0 %v245_v6  ;;  %382 = vmatprep.subr.mxu1 %v319_v19  ;;  %v279_v59 = vld [vmem:[#allocation7 + $0x288] sm:$0xff]  ;;  %v320_v60 = vld [vmem:[#allocation7 + $0x3d0] sm:$0xff]  ;;  %v278_v61 = vld [vmem:[#allocation7 + $0x280] sm:$0xff] }
  0x5f   :  { %428 = vmatpush1.msra.mxu0 %v244_v8  ;;  %383 = vmatpush2.msra.mxu1 %v318_v21  ;;  %v317_v62 = vld [vmem:[#allocation7 + $0x3b8] sm:$0xff]  ;;  %v316_v63 = vld [vmem:[#allocation7 + $0x3b0] sm:$0xff] }
  0x60   :  { %429 = vmatprep.subr.mxu0 %v241_v10  ;;  %384 = vmatprep.subr.mxu1 %v315_v23  ;;  %v313_v0 = vld [vmem:[#allocation7 + $0x398] sm:$0xff]  ;;  %v312_v1 = vld [vmem:[#allocation7 + $0x390] sm:$0xff] }
  0x61   :  { %430 = vmatpush1.msra.mxu0 %v240_v12  ;;  %385 = vmatpush2.msra.mxu1 %v314_v25  ;;  %v309_v2 = vld [vmem:[#allocation7 + $0x378] sm:$0xff]  ;;  %v308_v3 = vld [vmem:[#allocation7 + $0x370] sm:$0xff] }
  0x62   :  { %431 = vmatprep.subr.mxu0 %v237_v14  ;;  %386 = vmatprep.subr.mxu1 %v311_v27  ;;  %v305_v4 = vld [vmem:[#allocation7 + $0x358] sm:$0xff]  ;;  %v304_v5 = vld [vmem:[#allocation7 + $0x350] sm:$0xff] }
  0x63   :  { %432 = vmatpush1.msra.mxu0 %v236_v16  ;;  %387 = vmatpush2.msra.mxu1 %v310_v29  ;;  %v301_v6 = vld [vmem:[#allocation7 + $0x338] sm:$0xff]  ;;  %v300_v7 = vld [vmem:[#allocation7 + $0x330] sm:$0xff] }
  0x64   :  { %433 = vmatprep.subr.mxu0 %v233_v18  ;;  %388 = vmatprep.subr.mxu1 %v307_v31  ;;  %v297_v8 = vld [vmem:[#allocation7 + $0x318] sm:$0xff]  ;;  %v296_v9 = vld [vmem:[#allocation7 + $0x310] sm:$0xff]  ;;  %v275_v18 = vld [vmem:[#allocation7 + $0x268] sm:$0xff] }
  0x65   :  { %434 = vmatpush1.msra.mxu0 %v232_v20  ;;  %389 = vmatpush2.msra.mxu1 %v306_v33  ;;  %v293_v10 = vld [vmem:[#allocation7 + $0x2f8] sm:$0xff]  ;;  %v292_v11 = vld [vmem:[#allocation7 + $0x2f0] sm:$0xff]  ;;  %v274_v20 = vld [vmem:[#allocation7 + $0x260] sm:$0xff] }
  0x66   :  { %435 = vmatprep.subr.mxu0 %v229_v22  ;;  %390 = vmatprep.subr.mxu1 %v303_v35  ;;  %v289_v12 = vld [vmem:[#allocation7 + $0x2d8] sm:$0xff]  ;;  %v288_v13 = vld [vmem:[#allocation7 + $0x2d0] sm:$0xff]  ;;  %v271_v22 = vld [vmem:[#allocation7 + $0x248] sm:$0xff] }
  0x67   :  { %436 = vmatpush1.msra.mxu0 %v228_v24  ;;  %391 = vmatpush2.msra.mxu1 %v302_v37  ;;  %v285_v14 = vld [vmem:[#allocation7 + $0x2b8] sm:$0xff]  ;;  %v284_v15 = vld [vmem:[#allocation7 + $0x2b0] sm:$0xff]  ;;  %v270_v24 = vld [vmem:[#allocation7 + $0x240] sm:$0xff] }
  0x68   :  { %437 = vmatprep.subr.mxu0 %v225_v26  ;;  %392 = vmatprep.subr.mxu1 %v299_v39  ;;  %v281_v16 = vld [vmem:[#allocation7 + $0x298] sm:$0xff]  ;;  %v280_v17 = vld [vmem:[#allocation7 + $0x290] sm:$0xff]  ;;  %v267_v26 = vld [vmem:[#allocation7 + $0x228] sm:$0xff] }
  0x69   :  { %438 = vmatpush1.msra.mxu0 %v224_v28  ;;  %393 = vmatpush2.msra.mxu1 %v298_v41  ;;  %v277_v19 = vld [vmem:[#allocation7 + $0x278] sm:$0xff]  ;;  %v276_v21 = vld [vmem:[#allocation7 + $0x270] sm:$0xff]  ;;  %v266_v28 = vld [vmem:[#allocation7 + $0x220] sm:$0xff] }
  0x6a   :  { %439 = vmatprep.subr.mxu0 %v221_v30  ;;  %394 = vmatprep.subr.mxu1 %v295_v43  ;;  %v273_v23 = vld [vmem:[#allocation7 + $0x258] sm:$0xff]  ;;  %v272_v25 = vld [vmem:[#allocation7 + $0x250] sm:$0xff]  ;;  %v263_v30 = vld [vmem:[#allocation7 + $0x208] sm:$0xff] }
  0x6b   :  { %440 = vmatpush1.msra.mxu0 %v220_v32  ;;  %395 = vmatpush2.msra.mxu1 %v294_v45  ;;  %v269_v27 = vld [vmem:[#allocation7 + $0x238] sm:$0xff]  ;;  %v268_v29 = vld [vmem:[#allocation7 + $0x230] sm:$0xff]  ;;  %v262_v32 = vld [vmem:[#allocation7 + $0x200] sm:$0xff] }
  0x6c   :  { %441 = vmatprep.subr.mxu0 %v217_v34  ;;  %396 = vmatprep.subr.mxu1 %v291_v47  ;;  %v265_v31 = vld [vmem:[#allocation7 + $0x218] sm:$0xff]  ;;  %v264_v33 = vld [vmem:[#allocation7 + $0x210] sm:$0xff] }
  0x6d   :  { %442 = vmatpush1.msra.mxu0 %v216_v36  ;;  %397 = vmatpush2.msra.mxu1 %v290_v49  ;;  %v525_v34 = vld [vmem:[#allocation8 + $0xf8] sm:$0xff]  ;;  %v115_v36 = vlaneseq }
  0x6e   :  { %443 = vmatprep.subr.mxu0 %v213_v38  ;;  %398 = vmatprep.subr.mxu1 %v287_v51  ;;  %v557_v35 = vld [vmem:[#allocation8 + $0x1f8] sm:$0xff]  ;;  %v524_v51 = vld [vmem:[#allocation8 + $0xf0] sm:$0xff] }
  0x6f   :  { %444 = vmatpush1.msra.mxu0 %v212_v40  ;;  %399 = vmatpush2.msra.mxu1 %v286_v53  ;;  %v978_v37 = vshrl.u32 %v115_v36, 7  ;;  %v113_v39 = vld [vmem:[%s1006_s2] sm:$0x3]  ;;  %v508_v53 = vld [vmem:[#allocation8 + $0x70] sm:$0xff] }
  0x70   :  { %445 = vmatprep.subr.mxu0 %v209_v42  ;;  %400 = vmatprep.subr.mxu1 %v283_v55  ;;  %v509_v49 = vld [vmem:[#allocation8 + $0x78] sm:$0xff]  ;;  %v523_v55 = vld [vmem:[#allocation8 + $0xe8] sm:$0xff]  ;;  %v544_v36 = vld [vmem:[#allocation8 + $0x190] sm:$0xff] }
  0x71   :  { %446 = vmatpush1.msra.mxu0 %v208_v44  ;;  %401 = vmatpush2.msra.mxu1 %v282_v57  ;;  %v117_v38 = vsub.s32 0, %v978_v37  ;;  %v121_v40 = vsub.s32 1, %v978_v37  ;;  %v507_v57 = vld [vmem:[#allocation8 + $0x68] sm:$0xff] }
  0x72   :  { %447 = vmatprep.subr.mxu0 %v205_v46  ;;  %402 = vmatprep.subr.mxu1 %v279_v59  ;;  %v522_v59 = vld [vmem:[#allocation8 + $0xe0] sm:$0xff] }
  0x73   :  { %448 = vmatpush1.msra.mxu0 %v204_v48  ;;  %403 = vmatpush2.msra.mxu1 %v278_v61  ;;  %v118_v41 = vrot.slane %v113_v39, %v117_v38  ;;  %v122_v42 = vrot.slane %v113_v39, %v121_v40  ;;  %v506_v61 = vld [vmem:[#allocation8 + $0x60] sm:$0xff]  ;;  %v496_v39 = vld [vmem:[#allocation8 + $0x10] sm:$0xff] }
  0x74   :  { %449 = vmatprep.subr.mxu0 %v201_v50  ;;  %404 = vmatprep.subr.mxu1 %v275_v18  ;;  %v541_v50 = vld [vmem:[#allocation8 + $0x178] sm:$0xff] }
  0x75   :  { %450 = vmatpush1.msra.mxu0 %v200_v52  ;;  %405 = vmatpush2.msra.mxu1 %v274_v20  ;;  %v556_v52 = vld [vmem:[#allocation8 + $0x1f0] sm:$0xff]  ;;  %v533_v18 = vld [vmem:[#allocation8 + $0x138] sm:$0xff] }
  0x76   :  { %451 = vmatprep.subr.mxu0 %v325_v54  ;;  %406 = vmatprep.subr.mxu1 %v271_v22  ;;  %v540_v54 = vld [vmem:[#allocation8 + $0x170] sm:$0xff] }
  0x77   :  { %452 = vmatpush2.msra.mxu0 %v324_v56  ;;  %407 = vmatpush2.msra.mxu1 %v270_v24  ;;  %v555_v56 = vld [vmem:[#allocation8 + $0x1e8] sm:$0xff]  ;;  %v548_v20 = vld [vmem:[#allocation8 + $0x1b0] sm:$0xff] }
  0x78   :  { %453 = vmatprep.subr.mxu0 %v321_v58  ;;  %408 = vmatprep.subr.mxu1 %v267_v26  ;;  %v539_v58 = vld [vmem:[#allocation8 + $0x168] sm:$0xff]  ;;  %v532_v22 = vld [vmem:[#allocation8 + $0x130] sm:$0xff] }
  0x79   :  { %454 = vmatpush2.msra.mxu0 %v320_v60  ;;  %409 = vmatpush2.msra.mxu1 %v266_v28  ;;  %v554_v60 = vld [vmem:[#allocation8 + $0x1e0] sm:$0xff]  ;;  %v547_v24 = vld [vmem:[#allocation8 + $0x1a8] sm:$0xff] }
  0x7a   :  { %455 = vmatprep.subr.mxu0 %v317_v62  ;;  %410 = vmatprep.subr.mxu1 %v263_v30  ;;  %v538_v62 = vld [vmem:[#allocation8 + $0x160] sm:$0xff]  ;;  %v531_v26 = vld [vmem:[#allocation8 + $0x128] sm:$0xff] }
  0x7b   :  { %456 = vmatpush2.msra.mxu0 %v316_v63  ;;  %411 = vmatpush2.msra.mxu1 %v262_v32  ;;  %v521_v63 = vld [vmem:[#allocation8 + $0xd8] sm:$0xff]  ;;  %v546_v28 = vld [vmem:[#allocation8 + $0x1a0] sm:$0xff] }
  0x7c   :  { %457 = vmatprep.subr.mxu0 %v313_v0  ;;  %724 = vmatprep.subr.mxu1 %v525_v34  ;;  %v553_v0 = vld [vmem:[#allocation8 + $0x1d8] sm:$0xff]  ;;  %v530_v30 = vld [vmem:[#allocation8 + $0x120] sm:$0xff] }
  0x7d   :  { %458 = vmatpush2.msra.mxu0 %v312_v1  ;;  %v505_v1 = vld [vmem:[#allocation8 + $0x58] sm:$0xff] }
  0x7e   :  { %459 = vmatprep.subr.mxu0 %v309_v2  ;;  %v537_v2 = vld [vmem:[#allocation8 + $0x158] sm:$0xff] }
  0x7f   :  { %460 = vmatpush2.msra.mxu0 %v308_v3  ;;  %v520_v3 = vld [vmem:[#allocation8 + $0xd0] sm:$0xff]  ;;  %v545_v32 = vld [vmem:[#allocation8 + $0x198] sm:$0xff] }
  0x80   :  { %461 = vmatprep.subr.mxu0 %v305_v4  ;;  %v552_v4 = vld [vmem:[#allocation8 + $0x1d0] sm:$0xff]  ;;  %v529_v34 = vld [vmem:[#allocation8 + $0x118] sm:$0xff] }
  0x81   :  { %462 = vmatpush2.msra.mxu0 %v304_v5  ;;  %v504_v5 = vld [vmem:[#allocation8 + $0x50] sm:$0xff] }
  0x82   :  { %463 = vmatprep.subr.mxu0 %v301_v6  ;;  %v536_v6 = vld [vmem:[#allocation8 + $0x150] sm:$0xff] }
  0x83   :  { %464 = vmatpush2.msra.mxu0 %v300_v7  ;;  %v519_v7 = vld [vmem:[#allocation8 + $0xc8] sm:$0xff] }
  0x84   :  { %465 = vmatprep.subr.mxu0 %v297_v8  ;;  %v551_v8 = vld [vmem:[#allocation8 + $0x1c8] sm:$0xff] }
  0x85   :  { %466 = vmatpush2.msra.mxu0 %v296_v9  ;;  %v503_v9 = vld [vmem:[#allocation8 + $0x48] sm:$0xff] }
  0x86   :  { %467 = vmatprep.subr.mxu0 %v293_v10  ;;  %v535_v10 = vld [vmem:[#allocation8 + $0x148] sm:$0xff] }
  0x87   :  { %468 = vmatpush2.msra.mxu0 %v292_v11  ;;  %v518_v11 = vld [vmem:[#allocation8 + $0xc0] sm:$0xff] }
  0x88   :  { %469 = vmatprep.subr.mxu0 %v289_v12  ;;  %v550_v12 = vld [vmem:[#allocation8 + $0x1c0] sm:$0xff] }
  0x89   :  { %470 = vmatpush2.msra.mxu0 %v288_v13  ;;  %v502_v13 = vld [vmem:[#allocation8 + $0x40] sm:$0xff] }
  0x8a   :  { %471 = vmatprep.subr.mxu0 %v285_v14  ;;  %v534_v14 = vld [vmem:[#allocation8 + $0x140] sm:$0xff] }
  0x8b   :  { %472 = vmatpush2.msra.mxu0 %v284_v15  ;;  %v517_v15 = vld [vmem:[#allocation8 + $0xb8] sm:$0xff] }
  0x8c   :  { %473 = vmatprep.subr.mxu0 %v281_v16  ;;  %v549_v16 = vld [vmem:[#allocation8 + $0x1b8] sm:$0xff] }
  0x8d   :  { %474 = vmatpush2.msra.mxu0 %v280_v17  ;;  %v501_v17 = vld [vmem:[#allocation8 + $0x38] sm:$0xff] }
  0x8e   :  { %475 = vmatprep.subr.mxu0 %v277_v19  ;;  %v516_v19 = vld [vmem:[#allocation8 + $0xb0] sm:$0xff] }
  0x8f   :  { %476 = vmatpush2.msra.mxu0 %v276_v21  ;;  %v500_v21 = vld [vmem:[#allocation8 + $0x30] sm:$0xff] }
  0x90   :  { %477 = vmatprep.subr.mxu0 %v273_v23  ;;  %v515_v23 = vld [vmem:[#allocation8 + $0xa8] sm:$0xff] }
  0x91   :  { %478 = vmatpush2.msra.mxu0 %v272_v25  ;;  %v499_v25 = vld [vmem:[#allocation8 + $0x28] sm:$0xff] }
  0x92   :  { %479 = vmatprep.subr.mxu0 %v269_v27  ;;  %v514_v27 = vld [vmem:[#allocation8 + $0xa0] sm:$0xff] }
  0x93   :  { %480 = vmatpush2.msra.mxu0 %v268_v29  ;;  %v498_v29 = vld [vmem:[#allocation8 + $0x20] sm:$0xff] }
  0x94   :  { %481 = vmatprep.subr.mxu0 %v265_v31  ;;  %v513_v31 = vld [vmem:[#allocation8 + $0x98] sm:$0xff] }
  0x95   :  { %482 = vmatpush2.msra.mxu0 %v264_v33  ;;  %v497_v33 = vld [vmem:[#allocation8 + $0x18] sm:$0xff] }
  0x96   :  { %759 = vmatprep.subr.mxu0 %v557_v35  ;;  %v512_v35 = vld [vmem:[#allocation8 + $0x90] sm:$0xff] }
 0x116   :  { %v191_v43 = vpop.f32.mrf.mxu0 }
 0x117   :  { %v192_v44 = vadd.f32 %v191_v43, %v118_v41  ;;  %v528_v41 = vld [vmem:[#allocation8 + $0x110] sm:$0xff]  ;;  %v543_v43 = vld [vmem:[#allocation8 + $0x188] sm:$0xff] }
 0x118   :  { %v193_v45 = vpop.f32.mrf.mxu0 }
 0x119   :  { %v194_v46 = vadd.f32 %v193_v45, %v122_v42  ;;  %v196_v48 = vmax.f32 %v192_v44, 0.0  ;;  %v511_v42 = vld [vmem:[#allocation8 + $0x88] sm:$0xff] }
 0x11a   :  { %v495_v44 = vld [vmem:[#allocation8 + $0x8] sm:$0xff] }
 0x11b   :  { %v197_v47 = vmax.f32 %v194_v46, 0.0  ;;  %v527_v45 = vld [vmem:[#allocation8 + $0x108] sm:$0xff]  ;;  %v510_v46 = vld [vmem:[#allocation8 + $0x80] sm:$0xff] }
 0x11d   :  { %412 = vmatprep.mubr.f32.mxu1 %v197_v47  ;;  %483 = vmatprep.mubr.f32.mxu0 %v197_v47  ;;  %v542_v47 = vld [vmem:[#allocation8 + $0x180] sm:$0xff] }
 0x11e   :  { %413 = vmatmul.mubr.f32.vlgmr.msra.gmra.mxu1 %v196_v48  ;;  %484 = vmatmul.mubr.f32.vlgmr.msra.gmra.mxu0 %v196_v48  ;;  %v494_v48 = vld [vmem:[#allocation8] sm:$0xff] }
 0x11f   :  { %725 = vmatpush3.msra.mxu1 %v509_v49  ;;  %760 = vmatpush3.msra.mxu0 %v541_v50  ;;  %v526_v49 = vld [vmem:[#allocation8 + $0x100] sm:$0xff]  ;;  %v338_v50 = vsub.s32 2, %v978_v37 }
 0x120   :  { %726 = vmatprep.subr.mxu1 %v524_v51  ;;  %761 = vmatprep.subr.mxu0 %v556_v52  ;;  %v326_v51 = vld [vmem:[%s1008_s4] sm:$0xf]  ;;  %v342_v52 = vsub.s32 3, %v978_v37 }
 0x121   :  { %727 = vmatpush3.msra.mxu1 %v508_v53  ;;  %762 = vmatpush3.msra.mxu0 %v540_v54  ;;  %v331_v53 = vrot.slane %v326_v51, %v117_v38  ;;  %v339_v54 = vrot.slane %v326_v51, %v338_v50 }
 0x122   :  { %728 = vmatprep.subr.mxu1 %v523_v55  ;;  %763 = vmatprep.subr.mxu0 %v555_v56  ;;  %v335_v55 = vrot.slane %v326_v51, %v121_v40  ;;  %v343_v56 = vrot.slane %v326_v51, %v342_v52  ;;  %v723_v40 = vld [vmem:[%s1010_s6] ss:$0 sm:$0xff] }
 0x123   :  { %729 = vmatpush3.msra.mxu1 %v507_v57  ;;  %764 = vmatpush3.msra.mxu0 %v539_v58 }
 0x124   :  { %730 = vmatprep.subr.mxu1 %v522_v59  ;;  %765 = vmatprep.subr.mxu0 %v554_v60 }
 0x125   :  { %731 = vmatpush3.msra.mxu1 %v506_v61  ;;  %766 = vmatpush3.msra.mxu0 %v538_v62 }
 0x126   :  { %732 = vmatprep.subr.mxu1 %v521_v63  ;;  %767 = vmatprep.subr.mxu0 %v553_v0 }
 0x127   :  { %733 = vmatpush3.msra.mxu1 %v505_v1  ;;  %768 = vmatpush3.msra.mxu0 %v537_v2 }
 0x128   :  { %734 = vmatprep.subr.mxu1 %v520_v3  ;;  %769 = vmatprep.subr.mxu0 %v552_v4 }
 0x129   :  { %735 = vmatpush3.msra.mxu1 %v504_v5  ;;  %770 = vmatpush3.msra.mxu0 %v536_v6 }
 0x12a   :  { %736 = vmatprep.subr.mxu1 %v519_v7  ;;  %771 = vmatprep.subr.mxu0 %v551_v8 }
 0x12b   :  { %737 = vmatpush3.msra.mxu1 %v503_v9  ;;  %772 = vmatpush3.msra.mxu0 %v535_v10 }
 0x12c   :  { %738 = vmatprep.subr.mxu1 %v518_v11  ;;  %773 = vmatprep.subr.mxu0 %v550_v12 }
 0x12d   :  { %739 = vmatpush3.msra.mxu1 %v502_v13  ;;  %774 = vmatpush3.msra.mxu0 %v534_v14 }
 0x12e   :  { %740 = vmatprep.subr.mxu1 %v517_v15  ;;  %775 = vmatprep.subr.mxu0 %v549_v16 }
 0x12f   :  { %741 = vmatpush3.msra.mxu1 %v501_v17  ;;  %776 = vmatpush3.msra.mxu0 %v533_v18 }
 0x130   :  { %742 = vmatprep.subr.mxu1 %v516_v19  ;;  %777 = vmatprep.subr.mxu0 %v548_v20 }
 0x131   :  { %743 = vmatpush3.msra.mxu1 %v500_v21  ;;  %778 = vmatpush3.msra.mxu0 %v532_v22 }
 0x132   :  { %744 = vmatprep.subr.mxu1 %v515_v23  ;;  %779 = vmatprep.subr.mxu0 %v547_v24 }
 0x133   :  { %745 = vmatpush3.msra.mxu1 %v499_v25  ;;  %780 = vmatpush3.msra.mxu0 %v531_v26 }
 0x134   :  { %746 = vmatprep.subr.mxu1 %v514_v27  ;;  %781 = vmatprep.subr.mxu0 %v546_v28 }
 0x135   :  { %747 = vmatpush3.msra.mxu1 %v498_v29  ;;  %782 = vmatpush3.msra.mxu0 %v530_v30 }
 0x136   :  { %748 = vmatprep.subr.mxu1 %v513_v31  ;;  %783 = vmatprep.subr.mxu0 %v545_v32 }
 0x137   :  { %749 = vmatpush3.msra.mxu1 %v497_v33  ;;  %784 = vmatpush3.msra.mxu0 %v529_v34 }
 0x138   :  { %750 = vmatprep.subr.mxu1 %v512_v35  ;;  %785 = vmatprep.subr.mxu0 %v544_v36 }
 0x139   :  { %751 = vmatpush3.msra.mxu1 %v496_v39  ;;  %786 = vmatpush3.msra.mxu0 %v528_v41 }
 0x13a   :  { %752 = vmatprep.subr.mxu1 %v511_v42  ;;  %787 = vmatprep.subr.mxu0 %v543_v43 }
 0x13b   :  { %753 = vmatpush3.msra.mxu1 %v495_v44  ;;  %788 = vmatpush3.msra.mxu0 %v527_v45 }
 0x13c   :  { %754 = vmatprep.subr.mxu1 %v510_v46  ;;  %789 = vmatprep.subr.mxu0 %v542_v47 }
 0x13d   :  { %755 = vmatpush3.msra.mxu1 %v494_v48  ;;  %790 = vmatpush3.msra.mxu0 %v526_v49 }
 0x1de   :  { %v414_v57 = vpop.f32.mrf.mxu1  ;;  %v485_v58 = vpop.f32.mrf.mxu0 }
 0x1df   :  { %v415_v59 = vadd.f32 %v414_v57, %v331_v53  ;;  %v486_v60 = vadd.f32 %v485_v58, %v339_v54 }
 0x1e0   :  { %v416_v61 = vpop.f32.mrf.mxu1  ;;  %v487_v62 = vpop.f32.mrf.mxu0 }
 0x1e1   :  { %v417_v63 = vadd.f32 %v416_v61, %v335_v55  ;;  %v488_v0 = vadd.f32 %v487_v62, %v343_v56  ;;  %v490_v3 = vmax.f32 %v415_v59, 0.0  ;;  %v492_v4 = vmax.f32 %v486_v60, 0.0 }
 0x1e3   :  { %v491_v1 = vmax.f32 %v417_v63, 0.0  ;;  %v493_v2 = vmax.f32 %v488_v0, 0.0 }
 0x1e5   :  { %629 = vmatprep.mubr.f32.mxu1 %v491_v1  ;;  %699 = vmatprep.mubr.f32.mxu0 %v493_v2 }
 0x1e6   :  { %630 = vmatmul.mubr.f32.vlgmr.msra.gmra.mxu1 %v490_v3  ;;  %700 = vmatmul.mubr.f32.vlgmr.msra.gmra.mxu0 %v492_v4 }
 0x2a6   :  { %v756_v38 = vpop.f32.mrf.mxu1  ;;  %v791_v37 = vpop.f32.mrf.mxu0 }
 0x2a8   :  { %v757_v5 = vpop.f32.mrf.mxu1  ;;  %v792_v6 = vpop.f32.mrf.mxu0 }
 0x2a9   :  { %v758_v7 = vadd.f32 %v757_v5, %v756_v38  ;;  %v793_v9 = vadd.f32 %v792_v6, %v791_v37 }
 0x2ab   :  { %v632_v8 = vadd.f32 %v758_v7, %v723_v40 }
 0x2ad   :  { %v702_v10 = vadd.f32 %v793_v9, %v632_v8 }
 0x2af   :  { %705 = vst [vmem:[#allocation10] sm:$0xff] %v702_v10 }
 0x2b0   :  { %897 = shalt.err (!%p894_p10)
}
 0x2b1   :  { %715 = dma.vmem_to_hbm [thread:$0]  %s713_s28, 128, %s1011_s7, [#allocation4]  }
 0x2b2   :  { %912 = dma.done.wait [#allocation4], 128  }
 0x2b3   :  { %913 = vsyncadd [#allocation4], 4294967168 }
 0x2b4   :  { %719 = vsyncpa [#allocation3], 1 }
 0x2b5   :  { %720 = vsyncpa [#allocation6], 1 }
 0x2b6   :  { %721 = vsyncpa [#allocation9], 1 }
 0x2b7   :  { %722 = vsyncpa [#allocation4], 1 }

</bundles_post_ra>
